<compile_context>
chip_gen: v6e
topology: v6e:2x2x1
jax: 0.10.0
libtpu: 0.0.40
codegen_flags: <defaults>
</compile_context>

<pallas_src>
import functools

import jax
import jax.numpy as jnp
from jax import lax
from jax.experimental import pallas as pl
from jax.experimental.pallas import tpu as pltpu


def _sobel_flat_kernel(x_ref, gx_ref, gy_ref, *, W):
    """x_ref: (NB, C, HW) input block; gx_ref/gy_ref: (NB, C, HW) f32 blocks."""
    NB, C, HW = x_ref.shape
    f32 = jnp.float32

    # Channel sum: every (out, in) tap uses the same stencil, so the channel
    # reduction commutes with the spatial stencil.  (NB, HW): sublane = NB,
    # lane = HW (lane-dense).
    s = x_ref[:, 0, :].astype(f32)
    for c in range(1, C):
        s = s + x_ref[:, c, :].astype(f32)

    # One small (1, HW) iota -> boundary masks, broadcast inside the selects
    # instead of materializing full (NB, HW) int32 planes.
    pos = lax.broadcasted_iota(jnp.int32, (1, HW), 1)
    in_col = pos % W
    no_up = pos < W                 # first image row
    no_dn = pos >= HW - W           # last image row
    no_left = in_col == 0           # first image column
    no_right = in_col == W - 1      # last image column

    # Vertical (row) pass: +-W shifts along the flattened lane axis, zero halo.
    s_up = jnp.where(no_up, 0.0, pltpu.roll(s, shift=W % HW, axis=1))
    s_dn = jnp.where(no_dn, 0.0, pltpu.roll(s, shift=(HW - W) % HW, axis=1))
    smooth = s_up + 2.0 * s + s_dn        # column of the G_x stencil
    diff = s_up - s_dn                    # column of the G_y stencil

    # Horizontal (column) pass: +-1 shifts along lanes, zero halo at row edges.
    sm_l = jnp.where(no_left, 0.0, pltpu.roll(smooth, shift=1 % HW, axis=1))
    sm_r = jnp.where(no_right, 0.0, pltpu.roll(smooth, shift=(HW - 1) % HW, axis=1))
    df_l = jnp.where(no_left, 0.0, pltpu.roll(diff, shift=1 % HW, axis=1))
    df_r = jnp.where(no_right, 0.0, pltpu.roll(diff, shift=(HW - 1) % HW, axis=1))

    gx = (sm_l - sm_r).astype(gx_ref.dtype)
    gy = (df_l + 2.0 * diff + df_r).astype(gy_ref.dtype)

    # Every output channel is identical: store the same vregs C times instead
    # of materializing a broadcast (NB, C, HW) temporary.
    for c in range(C):
        gx_ref[:, c, :] = gx
        gy_ref[:, c, :] = gy


def _tpu_vmem_bytes():
    """Physical per-core VMEM, queried at trace time (conservative fallback)."""
    try:
        info = pltpu.get_tpu_info()
        v = getattr(info, "vmem_capacity_bytes", None)
        if v:
            return int(v)
    except Exception:
        pass
    return 64 * 1024 * 1024  # v7x per-TC physical VMEM (smallest current part)


def _pick_batch_fold(N, per_image_bytes, budget_bytes, min_steps):
    """Largest divisor NB of N whose block set fits the budget while keeping at
    least `min_steps` grid steps (double-buffering / dual-TC sharding)."""
    min_steps = max(1, min(min_steps, N))
    max_nb = max(1, budget_bytes // max(per_image_bytes, 1))
    best = 1
    for nb in range(1, N + 1):
        if N % nb == 0 and nb <= max_nb and (N // nb) >= min_steps:
            best = nb
    return best


def image_gradient(x):
    """x: (N, 3, H, W) -> (G_x, G_y), each (N, 3, H, W) float32."""
    N, C, H, W = x.shape
    assert C == 3, "ImageGradient expects 3 input channels"
    HW = H * W

    # Lane-dense layout: fold (H, W) into the lane axis.  Contiguous -> free view.
    x_flat = x.reshape(N, C, HW)

    # ---- generation-aware VMEM / tiling budget -----------------------------
    phys_vmem = _tpu_vmem_bytes()
    # 96 MiB limit on 128-MiB parts (v5e/v6e); 48 MiB on 64-MiB v7x.
    vmem_limit = int(min(phys_vmem * 3 // 4, 96 * 1024 * 1024))
    fold_budget = vmem_limit // 2        # headroom for pipeline / compiler scratch

    hw_pad = -(-HW // 128) * 128         # lane padding of the flattened axis
    c_pad = -(-C // 8) * 8               # sublane padding of the channel dim
    in_bytes = c_pad * hw_pad * x.dtype.itemsize
    out_bytes = 2 * c_pad * hw_pad * 4
    tmp_bytes = 12 * hw_pad * 4          # s/smooth/diff + rolled/where temporaries
    per_image = 2 * (in_bytes + out_bytes) + tmp_bytes   # double-buffered I/O + tmps

    dual_tc = phys_vmem < 96 * 1024 * 1024   # v7x-class: 2 TCs, 64 MiB each
    min_steps = 4 if dual_tc else 2          # 2 buffers (x2 cores on v7x)
    if N * per_image <= min(fold_budget, 4 * 1024 * 1024):
        min_steps = 1                        # tiny problem: one block, no pipeline

    NB = _pick_batch_fold(N, per_image, fold_budget, min_steps)
    grid = (N // NB,)
    # TODO(synk): if per_image > fold_budget (huge single image), add an
    # H-tiled grid with a 1-row halo via manual DMA instead of one giant block.

    blk = pl.BlockSpec((NB, C, HW), lambda n: (n, 0, 0))
    out_shape = (
        jax.ShapeDtypeStruct((N, C, HW), jnp.float32),
        jax.ShapeDtypeStruct((N, C, HW), jnp.float32),
    )

    cost = pl.CostEstimate(
        flops=25 * N * HW,
        transcendentals=0,
        bytes_accessed=N * C * HW * (x.dtype.itemsize + 2 * 4),
    )

    gx, gy = pl.pallas_call(
        functools.partial(_sobel_flat_kernel, W=W),
        out_shape=out_shape,
        grid_spec=pltpu.PrefetchScalarGridSpec(
            num_scalar_prefetch=0,
            grid=grid,
            in_specs=[blk],
            out_specs=[
                pl.BlockSpec((NB, C, HW), lambda n: (n, 0, 0)),
                pl.BlockSpec((NB, C, HW), lambda n: (n, 0, 0)),
            ],
        ),
        compiler_params=pltpu.CompilerParams(
            dimension_semantics=("parallel",),
            vmem_limit_bytes=vmem_limit,
        ),
        cost_estimate=cost,
    )(x_flat)
    return gx.reshape(N, C, H, W), gy.reshape(N, C, H, W)


def _reference(x):
    """Plain-JAX reference identical to the PyTorch module."""
    a = jnp.array([[1., 0., -1.], [2., 0., -2.], [1., 0., -1.]], jnp.float32)
    b = jnp.array([[1., 2., 1.], [0., 0., 0.], [-1., -2., -1.]], jnp.float32)
    wa = jnp.broadcast_to(a, (3, 3, 3, 3))
    wb = jnp.broadcast_to(b, (3, 3, 3, 3))
    xf = x.astype(jnp.float32)
    dn = lax.conv_dimension_numbers(xf.shape, wa.shape, ("NCHW", "OIHW", "NCHW"))
    gx = lax.conv_general_dilated(xf, wa, (1, 1), ((1, 1), (1, 1)),
                                  dimension_numbers=dn)
    gy = lax.conv_general_dilated(xf, wb, (1, 1), ((1, 1), (1, 1)),
                                  dimension_numbers=dn)
    return gx, gy


if __name__ == "__main__":
    key = jax.random.PRNGKey(0)
    N, C, H, W = 2, 3, 16, 16
    x = jax.random.normal(key, (N, C, H, W), dtype=jnp.float32)

    gx, gy = image_gradient(x)
    jax.block_until_ready((gx, gy))

    gx_ref, gy_ref = _reference(x)
    assert jnp.allclose(gx, gx_ref, atol=1e-4, rtol=1e-4)
    assert jnp.allclose(gy, gy_ref, atol=1e-4, rtol=1e-4)

    print("KERNEL_OK")
</pallas_src>

<mosaic_0001>
module attributes {stable_mosaic.version = 11 : i64} {
  func.func @_sobel_flat_kernel(%arg0: i32, %arg1: memref<2x3x256xf32, #tpu.memory_space<vmem>>, %arg2: memref<2x3x256xf32, #tpu.memory_space<vmem>>, %arg3: memref<2x3x256xf32, #tpu.memory_space<vmem>>) attributes {dimension_semantics = [#tpu.dimension_semantics<parallel>], iteration_bounds = array<i64: 1>, scalar_prefetch = 0 : i64, scratch_operands = 0 : i64, tpu.core_type = #tpu.core_type<tc>, window_params = [{transform_indices = @transform_0, window_bounds = array<i64: 2, 3, 256>}, {transform_indices = @transform_1, window_bounds = array<i64: 2, 3, 256>}, {transform_indices = @transform_2, window_bounds = array<i64: 2, 3, 256>}]} {
    %c0 = arith.constant 0 : index
    %c0_0 = arith.constant 0 : index
    %c0_1 = arith.constant 0 : index
    %0 = vector.load %arg1[%c0, %c0_0, %c0_1] : memref<2x3x256xf32, #tpu.memory_space<vmem>>, vector<2x1x256xf32>
    %1 = vector.shape_cast %0 : vector<2x1x256xf32> to vector<2x256xf32>
    %c0_2 = arith.constant 0 : index
    %c1 = arith.constant 1 : index
    %c0_3 = arith.constant 0 : index
    %2 = vector.load %arg1[%c0_2, %c1, %c0_3] : memref<2x3x256xf32, #tpu.memory_space<vmem>>, vector<2x1x256xf32>
    %3 = vector.shape_cast %2 : vector<2x1x256xf32> to vector<2x256xf32>
    %4 = arith.addf %1, %3 : vector<2x256xf32>
    %c0_4 = arith.constant 0 : index
    %c2 = arith.constant 2 : index
    %c0_5 = arith.constant 0 : index
    %5 = vector.load %arg1[%c0_4, %c2, %c0_5] : memref<2x3x256xf32, #tpu.memory_space<vmem>>, vector<2x1x256xf32>
    %6 = vector.shape_cast %5 : vector<2x1x256xf32> to vector<2x256xf32>
    %7 = arith.addf %4, %6 : vector<2x256xf32>
    %8 = tpu.iota {dimensions = array<i32: 1>} : vector<1x256xi32>
    %c16_i32 = arith.constant 16 : i32
    %c0_i32 = arith.constant 0 : i32
    %9 = arith.cmpi eq, %c16_i32, %c0_i32 : i32
    %c1_i32 = arith.constant 1 : i32
    %10 = arith.select %9, %c1_i32, %c16_i32 : i32
    %11 = vector.broadcast %10 : i32 to vector<1x256xi32>
    %12 = arith.remsi %8, %11 : vector<1x256xi32>
    %c0_i32_6 = arith.constant 0 : i32
    %13 = vector.broadcast %c0_i32_6 : i32 to vector<1x256xi32>
    %14 = arith.cmpi ne, %12, %13 : vector<1x256xi32>
    %c0_i32_7 = arith.constant 0 : i32
    %15 = vector.broadcast %c0_i32_7 : i32 to vector<1x256xi32>
    %16 = arith.cmpi slt, %12, %15 : vector<1x256xi32>
    %c0_i32_8 = arith.constant 0 : i32
    %17 = arith.cmpi slt, %10, %c0_i32_8 : i32
    %18 = vector.broadcast %17 : i1 to vector<1x256xi1>
    %19 = vector.broadcast %18 : vector<1x256xi1> to vector<1x256xi1>
    %20 = arith.xori %16, %19 : vector<1x256xi1>
    %21 = arith.andi %20, %14 : vector<1x256xi1>
    %22 = vector.broadcast %10 : i32 to vector<1x256xi32>
    %23 = arith.addi %12, %22 : vector<1x256xi32>
    %24 = arith.select %21, %23, %12 : vector<1x256xi1>, vector<1x256xi32>
    %c16_i32_9 = arith.constant 16 : i32
    %25 = vector.broadcast %c16_i32_9 : i32 to vector<1x256xi32>
    %26 = arith.cmpi slt, %8, %25 : vector<1x256xi32>
    %c240_i32 = arith.constant 240 : i32
    %27 = vector.broadcast %c240_i32 : i32 to vector<1x256xi32>
    %28 = arith.cmpi sge, %8, %27 : vector<1x256xi32>
    %c0_i32_10 = arith.constant 0 : i32
    %29 = vector.broadcast %c0_i32_10 : i32 to vector<1x256xi32>
    %30 = arith.cmpi eq, %24, %29 : vector<1x256xi32>
    %c15_i32 = arith.constant 15 : i32
    %31 = vector.broadcast %c15_i32 : i32 to vector<1x256xi32>
    %32 = arith.cmpi eq, %24, %31 : vector<1x256xi32>
    %c16_i32_11 = arith.constant 16 : i32
    %33 = tpu.dynamic_rotate %7 by %c16_i32_11 dim 1 : vector<2x256xf32>, i32 -> vector<2x256xf32>
    %cst = arith.constant 0.000000e+00 : f32
    %34 = vector.shape_cast %26 : vector<1x256xi1> to vector<1x256xi1>
    %35 = vector.broadcast %34 : vector<1x256xi1> to vector<2x256xi1>
    %36 = vector.broadcast %cst : f32 to vector<2x256xf32>
    %37 = arith.select %35, %36, %33 : vector<2x256xi1>, vector<2x256xf32>
    %c240_i32_12 = arith.constant 240 : i32
    %38 = tpu.dynamic_rotate %7 by %c240_i32_12 dim 1 : vector<2x256xf32>, i32 -> vector<2x256xf32>
    %cst_13 = arith.constant 0.000000e+00 : f32
    %39 = vector.shape_cast %28 : vector<1x256xi1> to vector<1x256xi1>
    %40 = vector.broadcast %39 : vector<1x256xi1> to vector<2x256xi1>
    %41 = vector.broadcast %cst_13 : f32 to vector<2x256xf32>
    %42 = arith.select %40, %41, %38 : vector<2x256xi1>, vector<2x256xf32>
    %cst_14 = arith.constant 2.000000e+00 : f32
    %43 = vector.broadcast %cst_14 : f32 to vector<2x256xf32>
    %44 = arith.mulf %43, %7 : vector<2x256xf32>
    %45 = arith.addf %37, %44 : vector<2x256xf32>
    %46 = arith.addf %45, %42 : vector<2x256xf32>
    %47 = arith.subf %37, %42 : vector<2x256xf32>
    %c1_i32_15 = arith.constant 1 : i32
    %48 = tpu.dynamic_rotate %46 by %c1_i32_15 dim 1 : vector<2x256xf32>, i32 -> vector<2x256xf32>
    %cst_16 = arith.constant 0.000000e+00 : f32
    %49 = vector.shape_cast %30 : vector<1x256xi1> to vector<1x256xi1>
    %50 = vector.broadcast %49 : vector<1x256xi1> to vector<2x256xi1>
    %51 = vector.broadcast %cst_16 : f32 to vector<2x256xf32>
    %52 = arith.select %50, %51, %48 : vector<2x256xi1>, vector<2x256xf32>
    %c255_i32 = arith.constant 255 : i32
    %53 = tpu.dynamic_rotate %46 by %c255_i32 dim 1 : vector<2x256xf32>, i32 -> vector<2x256xf32>
    %cst_17 = arith.constant 0.000000e+00 : f32
    %54 = vector.shape_cast %32 : vector<1x256xi1> to vector<1x256xi1>
    %55 = vector.broadcast %54 : vector<1x256xi1> to vector<2x256xi1>
    %56 = vector.broadcast %cst_17 : f32 to vector<2x256xf32>
    %57 = arith.select %55, %56, %53 : vector<2x256xi1>, vector<2x256xf32>
    %c1_i32_18 = arith.constant 1 : i32
    %58 = tpu.dynamic_rotate %47 by %c1_i32_18 dim 1 : vector<2x256xf32>, i32 -> vector<2x256xf32>
    %cst_19 = arith.constant 0.000000e+00 : f32
    %59 = vector.shape_cast %30 : vector<1x256xi1> to vector<1x256xi1>
    %60 = vector.broadcast %59 : vector<1x256xi1> to vector<2x256xi1>
    %61 = vector.broadcast %cst_19 : f32 to vector<2x256xf32>
    %62 = arith.select %60, %61, %58 : vector<2x256xi1>, vector<2x256xf32>
    %c255_i32_20 = arith.constant 255 : i32
    %63 = tpu.dynamic_rotate %47 by %c255_i32_20 dim 1 : vector<2x256xf32>, i32 -> vector<2x256xf32>
    %cst_21 = arith.constant 0.000000e+00 : f32
    %64 = vector.shape_cast %32 : vector<1x256xi1> to vector<1x256xi1>
    %65 = vector.broadcast %64 : vector<1x256xi1> to vector<2x256xi1>
    %66 = vector.broadcast %cst_21 : f32 to vector<2x256xf32>
    %67 = arith.select %65, %66, %63 : vector<2x256xi1>, vector<2x256xf32>
    %68 = arith.subf %52, %57 : vector<2x256xf32>
    %cst_22 = arith.constant 2.000000e+00 : f32
    %69 = vector.broadcast %cst_22 : f32 to vector<2x256xf32>
    %70 = arith.mulf %69, %47 : vector<2x256xf32>
    %71 = arith.addf %62, %70 : vector<2x256xf32>
    %72 = arith.addf %71, %67 : vector<2x256xf32>
    %c0_23 = arith.constant 0 : index
    %c0_24 = arith.constant 0 : index
    %c0_25 = arith.constant 0 : index
    %73 = vector.load %arg2[%c0_23, %c0_24, %c0_25] : memref<2x3x256xf32, #tpu.memory_space<vmem>>, vector<2x1x256xf32>
    %74 = vector.shape_cast %73 : vector<2x1x256xf32> to vector<2x256xf32>
    %75 = vector.shape_cast %68 : vector<2x256xf32> to vector<2x1x256xf32>
    tpu.vector_store %arg2[%c0_23, %c0_24, %c0_25], %75 {strides = array<i32>} : memref<2x3x256xf32, #tpu.memory_space<vmem>>, vector<2x1x256xf32>,
    %c0_26 = arith.constant 0 : index
    %c0_27 = arith.constant 0 : index
    %c0_28 = arith.constant 0 : index
    %76 = vector.load %arg3[%c0_26, %c0_27, %c0_28] : memref<2x3x256xf32, #tpu.memory_space<vmem>>, vector<2x1x256xf32>
    %77 = vector.shape_cast %76 : vector<2x1x256xf32> to vector<2x256xf32>
    %78 = vector.shape_cast %72 : vector<2x256xf32> to vector<2x1x256xf32>
    tpu.vector_store %arg3[%c0_26, %c0_27, %c0_28], %78 {strides = array<i32>} : memref<2x3x256xf32, #tpu.memory_space<vmem>>, vector<2x1x256xf32>,
    %c0_29 = arith.constant 0 : index
    %c1_30 = arith.constant 1 : index
    %c0_31 = arith.constant 0 : index
    %79 = vector.load %arg2[%c0_29, %c1_30, %c0_31] : memref<2x3x256xf32, #tpu.memory_space<vmem>>, vector<2x1x256xf32>
    %80 = vector.shape_cast %79 : vector<2x1x256xf32> to vector<2x256xf32>
    %81 = vector.shape_cast %68 : vector<2x256xf32> to vector<2x1x256xf32>
    tpu.vector_store %arg2[%c0_29, %c1_30, %c0_31], %81 {strides = array<i32>} : memref<2x3x256xf32, #tpu.memory_space<vmem>>, vector<2x1x256xf32>,
    %c0_32 = arith.constant 0 : index
    %c1_33 = arith.constant 1 : index
    %c0_34 = arith.constant 0 : index
    %82 = vector.load %arg3[%c0_32, %c1_33, %c0_34] : memref<2x3x256xf32, #tpu.memory_space<vmem>>, vector<2x1x256xf32>
    %83 = vector.shape_cast %82 : vector<2x1x256xf32> to vector<2x256xf32>
    %84 = vector.shape_cast %72 : vector<2x256xf32> to vector<2x1x256xf32>
    tpu.vector_store %arg3[%c0_32, %c1_33, %c0_34], %84 {strides = array<i32>} : memref<2x3x256xf32, #tpu.memory_space<vmem>>, vector<2x1x256xf32>,
    %c0_35 = arith.constant 0 : index
    %c2_36 = arith.constant 2 : index
    %c0_37 = arith.constant 0 : index
    %85 = vector.load %arg2[%c0_35, %c2_36, %c0_37] : memref<2x3x256xf32, #tpu.memory_space<vmem>>, vector<2x1x256xf32>
    %86 = vector.shape_cast %85 : vector<2x1x256xf32> to vector<2x256xf32>
    %87 = vector.shape_cast %68 : vector<2x256xf32> to vector<2x1x256xf32>
    tpu.vector_store %arg2[%c0_35, %c2_36, %c0_37], %87 {strides = array<i32>} : memref<2x3x256xf32, #tpu.memory_space<vmem>>, vector<2x1x256xf32>,
    %c0_38 = arith.constant 0 : index
    %c2_39 = arith.constant 2 : index
    %c0_40 = arith.constant 0 : index
    %88 = vector.load %arg3[%c0_38, %c2_39, %c0_40] : memref<2x3x256xf32, #tpu.memory_space<vmem>>, vector<2x1x256xf32>
    %89 = vector.shape_cast %88 : vector<2x1x256xf32> to vector<2x256xf32>
    %90 = vector.shape_cast %72 : vector<2x256xf32> to vector<2x1x256xf32>
    tpu.vector_store %arg3[%c0_38, %c2_39, %c0_40], %90 {strides = array<i32>} : memref<2x3x256xf32, #tpu.memory_space<vmem>>, vector<2x1x256xf32>,
    return
  }
  func.func @transform_0(%arg0: i32) -> (i32, i32, i32) {
    %c0_i32 = arith.constant 0 : i32
    %c0_i32_0 = arith.constant 0 : i32
    %c0_i32_1 = arith.constant 0 : i32
    return %arg0, %c0_i32, %c0_i32_0 : i32, i32, i32
  }
  func.func @transform_1(%arg0: i32) -> (i32, i32, i32) {
    %c0_i32 = arith.constant 0 : i32
    %c0_i32_0 = arith.constant 0 : i32
    %c0_i32_1 = arith.constant 0 : i32
    return %arg0, %c0_i32, %c0_i32_0 : i32, i32, i32
  }
  func.func @transform_2(%arg0: i32) -> (i32, i32, i32) {
    %c0_i32 = arith.constant 0 : i32
    %c0_i32_0 = arith.constant 0 : i32
    %c0_i32_1 = arith.constant 0 : i32
    return %arg0, %c0_i32, %c0_i32_0 : i32, i32, i32
  }
}

</mosaic_0001>

<bundles_post_ra>
// kernel: tpu_custom_call.1
= control target key start
LH: loop header
LB: loop body
LE: loop exit
PB: predicated region body
PF: predicated region fallthrough
CT: control target
= control target key end

     0   :  { %v25_v0 = vlaneseq  ;;  %v305_v3 = vmov 1966171168   ;;  %s306_s21 = smov 112   ;;  %s307_s22 = smov 16   ;;  %s472_s0 = inlined_call_operand.vmem [shape: f32[2,3,256], index: 0, kind: input, shape index: {}]   ;;  %s473_s1 = inlined_call_operand.vmem [shape: f32[2,3,256], index: 1, kind: output, shape index: {0}]   ;;  %s474_s2 = inlined_call_operand.vmem [shape: f32[2,3,256], index: 2, kind: output, shape index: {1}]  }
   0x1   :  { %v10_v1 = vld [vmem:[%s472_s0] ss:$4 sm:$0x3]  ;;  %v285_v2 = vld [vmem:[%s472_s0 + $0x8] ss:$4 sm:$0x3]  ;;  %v64_v4 = vunpack.c.l.s4 %v305_v3 }
   0x2   :  { %v286_v5 = vld [vmem:[%s472_s0 + $0x1] ss:$4 sm:$0x3]  ;;  %v287_v6 = vld [vmem:[%s472_s0 + $0x9] ss:$4 sm:$0x3] }
   0x3   :  { %v17_v7 = vadd.f32 %v286_v5, %v10_v1  ;;  %v18_v8 = vadd.f32 %v287_v6, %v285_v2  ;;  %v288_v9 = vld [vmem:[%s472_s0 + $0x2] ss:$4 sm:$0x3]  ;;  %v289_v10 = vld [vmem:[%s472_s0 + $0xa] ss:$4 sm:$0x3]  ;;  %v65_v11 = vunpack.c.0.s8 %v64_v4 }
   0x4   :  { %v67_v12 = vshrl.u32 %v25_v0, 7  ;;  %v350_v24 = vand.u32 127, %v25_v0  ;;  %s308_s0 = smov 1   ;;  %s309_s23 = smov 127   ;;  %vm403_vm9 = vcmp.lt.s32.totalorder %v25_v0, 256 }
   0x5   :  { %v23_v13 = vadd.f32 %v288_v9, %v17_v7  ;;  %v24_v14 = vadd.f32 %v289_v10, %v18_v8 }
   0x6   :  { %v344_v15 = vsub.s32 %v65_v11, %v67_v12  ;;  %v27_v26 = vadd.s32 128, %v350_v24  ;;  %vm103_vm0 = vcmp.lt.s32.totalorder %v350_v24, 112  ;;  %vm52_vm1 = vcmp.lt.s32.totalorder %v350_v24, 16 }
   0x7   :  { %v62_v16 = vcombine.low %v23_v13, %v24_v14  ;;  %v112_v17 = vmul.f32 2.0, %v23_v13  ;;  %v113_v18 = vmul.f32 2.0, %v24_v14  ;;  %v32_v48 = vand.u32 15, %v350_v24 }
   0x8   :  { %vm55_vm2 = vcmp.ge.s32.totalorder %v27_v26, 240  ;;  %v39_v49 = vand.u32 15, %v27_v26  ;;  %vm151_vm3 = vcmp.lt.s32.totalorder %v350_v24, 1  ;;  %vm164_vm6 = vcmp.lt.s32.totalorder %v350_v24, 127 }
   0x9   :  { %v69_v19 = vrot.slane %v62_v16, %v344_v15  ;;  %v116_v20 = vcombine.low %v112_v17, %v113_v18  ;;  %vm360_vm4 = vcmp.eq.s32.totalorder %v32_v48, 0  ;;  %vm369_vm7 = vcmp.eq.s32.totalorder %v32_v48, 15 }
   0xa   :  { %vm364_vm5 = vcmp.eq.s32.totalorder %v39_v49, 0  ;;  %vm373_vm8 = vcmp.eq.s32.totalorder %v39_v49, 15 }
   0xb   :  { %v77_v21 = vrot.slane %v69_v19, %v344_v15  ;;  %v70_v22 = vcombine.high %v69_v19, %v69_v19  ;;  %v123_v25 = vrot.slane %v116_v20, %v344_v15 }
   0xd   :  { %99 = vrot.lane.b32.xlu1 %v77_v21, %s306_s21  ;;  %87 = vrot.lane.b32.xlu0 %v77_v21, %s307_s22  ;;  %v84_v23 = vrot.slane %v70_v22, %v344_v15  ;;  %v124_v27 = vcombine.high %v123_v25, %v123_v25  ;;  %v131_v30 = vrot.slane %v123_v25, %v344_v15 }
   0xf   :  { %v138_v31 = vrot.slane %v124_v27, %v344_v15 }
  0x11   :  { %101 = vrot.lane.b32.xlu1 %v84_v23, %s306_s21  ;;  %89 = vrot.lane.b32.xlu0 %v84_v23, %s307_s22 }
  0x7f   :  { %v100_v28 = vpop.permute.xlu1 %99  ;;  %v88_v29 = vpop.permute.xlu0 %87 }
  0x83   :  { %v102_v32 = vpop.permute.xlu1 %101  ;;  %v90_v33 = vpop.permute.xlu0 %89 }
  0x84   :  { %v104_v34 = vsel %vm103_vm0, %v100_v28, %v102_v32  ;;  %v105_v35 = vsel %vm103_vm0, %v102_v32, %v100_v28  ;;  %v91_v36 = vsel %vm52_vm1, %v88_v29, %v90_v33  ;;  %v92_v37 = vsel %vm52_vm1, %v90_v33, %v88_v29 }
  0x85   :  { %v111_v38 = vsel %vm55_vm2, 0.0, %v105_v35  ;;  %v97_v39 = vsel %vm52_vm1, 0.0, %v92_v37  ;;  %v142_v41 = vadd.f32 %v138_v31, %v91_v36 }
  0x86   :  { %v141_v40 = vadd.f32 %v131_v30, %v97_v39  ;;  %v145_v42 = vsub.f32 %v97_v39, %v104_v34  ;;  %v146_v43 = vsub.f32 %v91_v36, %v111_v38 }
  0x87   :  { %v144_v45 = vadd.f32 %v142_v41, %v111_v38 }
  0x88   :  { %173 = vrot.lane.b32.xlu0 %v145_v42, %s308_s0  ;;  %175 = vrot.lane.b32.xlu1 %v146_v43, %s308_s0  ;;  %v143_v44 = vadd.f32 %v141_v40, %v104_v34  ;;  %v191_v60 = vmul.f32 2.0, %v145_v42  ;;  %v192_v8 = vmul.f32 2.0, %v146_v43 }
  0x8c   :  { %147 = vrot.lane.b32.xlu0 %v143_v44, %s308_s0  ;;  %149 = vrot.lane.b32.xlu1 %v144_v45, %s308_s0 }
  0x90   :  { %160 = vrot.lane.b32.xlu0 %v143_v44, %s309_s23  ;;  %162 = vrot.lane.b32.xlu1 %v144_v45, %s309_s23 }
  0x94   :  { %181 = vrot.lane.b32.xlu0 %v145_v42, %s309_s23  ;;  %183 = vrot.lane.b32.xlu1 %v146_v43, %s309_s23 }
  0xfa   :  { %v174_v46 = vpop.permute.xlu0 %173  ;;  %v176_v47 = vpop.permute.xlu1 %175 }
  0xfb   :  { %v177_v54 = vsel %vm151_vm3, %v174_v46, %v176_v47  ;;  %v178_v55 = vsel %vm151_vm3, %v176_v47, %v174_v46 }
  0xfc   :  { %v179_v63 = vsel %vm360_vm4, 0.0, %v178_v55  ;;  %v180_v1 = vsel %vm364_vm5, 0.0, %v177_v54 }
  0xfd   :  { %v193_v11 = vadd.f32 %v191_v60, %v179_v63  ;;  %v194_v14 = vadd.f32 %v192_v8, %v180_v1 }
  0xfe   :  { %v148_v50 = vpop.permute.xlu0 %147  ;;  %v150_v51 = vpop.permute.xlu1 %149 }
  0xff   :  { %v152_v56 = vsel %vm151_vm3, %v148_v50, %v150_v51  ;;  %v153_v57 = vsel %vm151_vm3, %v150_v51, %v148_v50 }
 0x100   :  { %v158_v4 = vsel %vm360_vm4, 0.0, %v153_v57  ;;  %v159_v5 = vsel %vm364_vm5, 0.0, %v152_v56 }
 0x102   :  { %v161_v61 = vpop.permute.xlu0 %160  ;;  %v163_v62 = vpop.permute.xlu1 %162 }
 0x103   :  { %v165_v2 = vsel %vm164_vm6, %v161_v61, %v163_v62  ;;  %v166_v3 = vsel %vm164_vm6, %v163_v62, %v161_v61 }
 0x104   :  { %v171_v6 = vsel %vm369_vm7, 0.0, %v165_v2  ;;  %v172_v7 = vsel %vm373_vm8, 0.0, %v166_v3 }
 0x105   :  { %v189_v9 = vsub.f32 %v158_v4, %v171_v6  ;;  %v190_v10 = vsub.f32 %v159_v5, %v172_v7 }
 0x106   :  { %v182_v12 = vpop.permute.xlu0 %181  ;;  %v184_v13 = vpop.permute.xlu1 %183 }
 0x107   :  { %v199_v16 = vcombine.low %v189_v9, %v190_v10  ;;  %v185_v17 = vsel %vm164_vm6, %v182_v12, %v184_v13  ;;  %v186_v18 = vsel %vm164_vm6, %v184_v13, %v182_v12 }
 0x108   :  { %v187_v19 = vsel %vm369_vm7, 0.0, %v185_v17  ;;  %v188_v20 = vsel %vm373_vm8, 0.0, %v186_v18 }
 0x109   :  { %v206_v21 = vrot.slane %v199_v16, %v344_v15  ;;  %v195_v22 = vadd.f32 %v193_v11, %v187_v19  ;;  %v196_v23 = vadd.f32 %v194_v14, %v188_v20 }
 0x10b   :  { %v207_v26 = vcombine.high %v206_v21, %v206_v21  ;;  %v214_v27 = vrot.slane %v206_v21, %v344_v15  ;;  %v233_v24 = vcombine.low %v195_v22, %v196_v23 }
 0x10d   :  { %v221_v28 = vrot.slane %v207_v26, %v344_v15  ;;  %228 = vst.msk [vmem:[%s473_s1] ss:$4 sm:$0x3] %vm403_vm9, %v214_v27  ;;  %292 = vst.msk [vmem:[%s473_s1 + $0x1] ss:$4 sm:$0x3] %vm403_vm9, %v214_v27  ;;  %v240_v0 = vrot.slane %v233_v24, %v344_v15 }
 0x10e   :  { %296 = vst.msk [vmem:[%s473_s1 + $0x2] ss:$4 sm:$0x3] %vm403_vm9, %v214_v27 }
 0x10f   :  { %290 = vst.msk [vmem:[%s473_s1 + $0x8] ss:$4 sm:$0x3] %vm403_vm9, %v221_v28  ;;  %293 = vst.msk [vmem:[%s473_s1 + $0x9] ss:$4 sm:$0x3] %vm403_vm9, %v221_v28  ;;  %v241_v29 = vcombine.high %v240_v0, %v240_v0  ;;  %v248_v30 = vrot.slane %v240_v0, %v344_v15 }
 0x110   :  { %297 = vst.msk [vmem:[%s473_s1 + $0xa] ss:$4 sm:$0x3] %vm403_vm9, %v221_v28 }
 0x111   :  { %v255_v31 = vrot.slane %v241_v29, %v344_v15  ;;  %258 = vst.msk [vmem:[%s474_s2] ss:$4 sm:$0x3] %vm403_vm9, %v248_v30  ;;  %294 = vst.msk [vmem:[%s474_s2 + $0x1] ss:$4 sm:$0x3] %vm403_vm9, %v248_v30 }
 0x112   :  { %298 = vst.msk [vmem:[%s474_s2 + $0x2] ss:$4 sm:$0x3] %vm403_vm9, %v248_v30 }
 0x113   :  { %291 = vst.msk [vmem:[%s474_s2 + $0x8] ss:$4 sm:$0x3] %vm403_vm9, %v255_v31  ;;  %295 = vst.msk [vmem:[%s474_s2 + $0x9] ss:$4 sm:$0x3] %vm403_vm9, %v255_v31 }
 0x114   :  { %299 = vst.msk [vmem:[%s474_s2 + $0xa] ss:$4 sm:$0x3] %vm403_vm9, %v255_v31 }

</bundles_post_ra>
